<compile_context>
chip_gen: v7x
topology: tpu7x:2x2x1
jax: 0.10.0
libtpu: 0.0.40
codegen_flags: <defaults>
</compile_context>

<pallas_src>
import functools

import jax
import jax.numpy as jnp
from jax import lax
from jax.experimental import pallas as pl
from jax.experimental.pallas import tpu as pltpu


def _round_up(n, m):
    return ((n + m - 1) // m) * m


def _chip_defaults():
    """Per-generation (query tile, vmem cap, bf16-exp) defaults."""
    try:
        kind = jax.devices()[0].device_kind.lower()
    except Exception:  # pragma: no cover - defensive
        kind = ""
    if "v7" in kind:
        # 64 MiB physical VMEM per TensorCore: tight budget, smaller tile.
        return 128, 48 * 1024 * 1024, True
    if "v6" in kind:
        return 256, 96 * 1024 * 1024, True
    if "v5" in kind:
        # v5e has no bf16 EUP: keep the softmax exp in f32.
        return 256, 96 * 1024 * 1024, False
    return 128, 64 * 1024 * 1024, False


def _attn_core_kernel(q_ref, k_ref, v_ref, out_ref, *, n_valid, exp_bf16):
    """One (batch b, query-tile qt) grid step of softmax attention.

    q_ref : (1, TQ,   Cq) bf16   query tile (bias already folded in)
    k_ref : (1, Npad, Cq) bf16   all keys for this batch row (resident)
    v_ref : (1, Npad, C ) bf16   all values for this batch row (resident)
    out   : (1, TQ,   C ) f32    unnormalized-module attn_out tile
    """
    q = q_ref[0]                                             # (TQ, Cq)
    k = k_ref[0]                                             # (Npad, Cq)
    v = v_ref[0]                                             # (Npad, C)
    n_pad = k.shape[0]

    # energy[i, j] = q_i . k_j  — contract the shared Cq axis; no transpose
    # of the (TQ, Npad) matrix is ever materialized.
    energy = lax.dot_general(
        q, k, (((1,), (1,)), ((), ())),
        preferred_element_type=jnp.float32)                  # (TQ, Npad) f32

    if n_pad > n_valid:  # static trace-time branch: mask padded keys.
        lane = lax.broadcasted_iota(jnp.int32, (1, n_pad), 1)
        energy = jnp.where(lane < n_valid, energy, -1e30)

    e_max = jnp.max(energy, axis=-1, keepdims=True)          # (TQ, 1)
    if exp_bf16:
        # v6e/v7x: bf16 EUP roughly doubles exp throughput; p is consumed in
        # bf16 by the MXU anyway.  Denominator still accumulates in f32.
        p = jnp.exp((energy - e_max).astype(jnp.bfloat16))   # (TQ, Npad) bf16
        denom = jnp.sum(p.astype(jnp.float32), axis=-1, keepdims=True)
        pv = jnp.dot(p, v, preferred_element_type=jnp.float32)      # (TQ, C)
    else:
        p = jnp.exp(energy - e_max)                          # (TQ, Npad) f32
        denom = jnp.sum(p, axis=-1, keepdims=True)
        pv = jnp.dot(p.astype(jnp.bfloat16), v,
                     preferred_element_type=jnp.float32)             # (TQ, C)

    # Fold the softmax normalization after the PV matmul (EUP recip, not a
    # VPU divide of the (TQ, Npad) probability matrix).
    out_ref[0] = (pv * pl.reciprocal(denom, approx=True)).astype(out_ref.dtype)


def self_attn_forward(x, params, *, tq=None, exp_bf16=None, interpret=False):
    """SAGAN Self_Attn forward.  x: (B, C, H, W) float; params from init_params."""
    B, C, H, W = x.shape
    N = H * W
    Cq = params["wq"].shape[0]

    d_tq, d_vmem, d_exp_bf16 = _chip_defaults()
    if tq is None:
        tq = d_tq
    if exp_bf16 is None:
        exp_bf16 = d_exp_bf16

    n_pad = _round_up(max(N, 128), 128)
    TQ = tq if n_pad % tq == 0 else 128
    n_qt = n_pad // TQ

    xf = x.reshape(B, C, N).astype(jnp.float32)

    # 1x1-conv projections (with biases) hoisted out of the kernel; computed
    # in f32 by XLA, handed to the kernel as bf16.  Same FLOPs as in-kernel,
    # but keeps the kernel free of per-batch scratch init so every grid axis
    # is parallel, and halves the kernel's HBM read.
    q = (jnp.einsum("qc,bcn->bnq", params["wq"], xf) + params["bq"]).astype(jnp.bfloat16)
    k = (jnp.einsum("qc,bcn->bnq", params["wk"], xf) + params["bk"]).astype(jnp.bfloat16)
    v = (jnp.einsum("oc,bcn->bno", params["wv"], xf) + params["bv"]).astype(jnp.bfloat16)

    if n_pad != N:
        pad = ((0, 0), (0, n_pad - N), (0, 0))
        q = jnp.pad(q, pad)
        k = jnp.pad(k, pad)
        v = jnp.pad(v, pad)

    kernel = functools.partial(_attn_core_kernel, n_valid=N, exp_bf16=exp_bf16)

    attn_nc = pl.pallas_call(
        kernel,
        out_shape=jax.ShapeDtypeStruct((B, n_pad, C), jnp.float32),
        grid=(B, n_qt),
        in_specs=[
            pl.BlockSpec((1, TQ, Cq), lambda b, qt: (b, qt, 0)),     # query tile
            pl.BlockSpec((1, n_pad, Cq), lambda b, qt: (b, 0, 0)),   # keys (per-batch resident)
            pl.BlockSpec((1, n_pad, C), lambda b, qt: (b, 0, 0)),    # values (per-batch resident)
        ],
        out_specs=pl.BlockSpec((1, TQ, C), lambda b, qt: (b, qt, 0)),
        compiler_params=pltpu.CompilerParams(
            dimension_semantics=("parallel", "parallel"),
            vmem_limit_bytes=d_vmem,
        ),
        interpret=interpret,
    )(q, k, v)

    # Epilogue in the original NCHW layout (fused by XLA with the transpose):
    # out = gamma * attn_out + x ; module then returns out + x  =>  + 2*x.
    attn = jnp.transpose(attn_nc[:, :N, :], (0, 2, 1)).reshape(B, C, H, W)
    return params["gamma"][0] * attn + 2.0 * x.astype(jnp.float32)


def self_attn_reference(x, params):
    """Pure-JAX f32 reference of Self_Attn.forward (gamma*attn_out + 2x)."""
    B, C, H, W = x.shape
    N = H * W
    xf = x.reshape(B, C, N).astype(jnp.float32)
    q = jnp.einsum("qc,bcn->bqn", params["wq"], xf) + params["bq"][None, :, None]
    k = jnp.einsum("qc,bcn->bqn", params["wk"], xf) + params["bk"][None, :, None]
    v = jnp.einsum("oc,bcn->bon", params["wv"], xf) + params["bv"][None, :, None]
    energy = jnp.einsum("bqi,bqj->bij", q, k)          # (B, N, N)
    attn = jax.nn.softmax(energy, axis=-1)
    out = jnp.einsum("bcj,bij->bci", v, attn)          # (B, C, N)
    out = params["gamma"][0] * out + 2.0 * xf
    return out.reshape(B, C, H, W)


def init_params(key, in_dim):
    """Deterministic init. Shapes match Self_Attn.__init__ (1x1 convs stored as
    matrices). gamma is 0 in the module; use a nonzero value so the attention
    path is exercised."""
    assert in_dim % 8 == 0, "in_dim must be divisible by 8 (query/key channels)"
    cq = in_dim // 8
    k = jax.random.split(key, 6)
    scale = 0.1
    return {
        "wq": scale * jax.random.normal(k[0], (cq, in_dim), jnp.float32),
        "bq": scale * jax.random.normal(k[1], (cq,), jnp.float32),
        "wk": scale * jax.random.normal(k[2], (cq, in_dim), jnp.float32),
        "bk": scale * jax.random.normal(k[3], (cq,), jnp.float32),
        "wv": scale * jax.random.normal(k[4], (in_dim, in_dim), jnp.float32),
        "bv": scale * jax.random.normal(k[5], (in_dim,), jnp.float32),
        "gamma": jnp.array([0.5], jnp.float32),
    }


if __name__ == "__main__":
    key = jax.random.PRNGKey(0)
    kx, kp, kx2 = jax.random.split(key, 3)

    # Case 1: B=2, C=32 (Cq=4), H=W=16 -> N=256, two query tiles with tq=128.
    B, C, H, W = 2, 32, 16, 16
    params = init_params(kp, C)
    x = jax.random.normal(kx, (B, C, H, W), jnp.float32)
    out = jax.block_until_ready(self_attn_forward(x, params, tq=128))
    ref = self_attn_reference(x, params)
    assert out.shape == ref.shape, (out.shape, ref.shape)
    err = float(jnp.max(jnp.abs(out - ref)))
    assert jnp.allclose(out, ref, rtol=3e-2, atol=5e-2), err

    # Case 2: B=1, H=W=12 -> N=144 (not a multiple of 128): exercises the
    # key-padding/masking path and the single-image batch.
    x2 = jax.random.normal(kx2, (1, C, 12, 12), jnp.float32)
    out2 = jax.block_until_ready(self_attn_forward(x2, params, tq=128))
    ref2 = self_attn_reference(x2, params)
    err2 = float(jnp.max(jnp.abs(out2 - ref2)))
    assert jnp.allclose(out2, ref2, rtol=3e-2, atol=5e-2), err2

    print("KERNEL_OK")
</pallas_src>

<mosaic_0001>
module attributes {stable_mosaic.version = 11 : i64} {
  func.func @_attn_core_kernel(%arg0: i32, %arg1: i32, %arg2: memref<1x128x4xbf16, #tpu.memory_space<vmem>>, %arg3: memref<1x256x4xbf16, #tpu.memory_space<vmem>>, %arg4: memref<1x256x32xbf16, #tpu.memory_space<vmem>>, %arg5: memref<1x128x32xf32, #tpu.memory_space<vmem>>) attributes {dimension_semantics = [#tpu.dimension_semantics<parallel>, #tpu.dimension_semantics<parallel>], iteration_bounds = array<i64: 2, 2>, scalar_prefetch = 0 : i64, scratch_operands = 0 : i64, tpu.core_type = #tpu.core_type<tc>, window_params = [{transform_indices = @transform_0, window_bounds = array<i64: 1, 128, 4>}, {transform_indices = @transform_1, window_bounds = array<i64: 1, 256, 4>}, {transform_indices = @transform_2, window_bounds = array<i64: 1, 256, 32>}, {transform_indices = @transform_3, window_bounds = array<i64: 1, 128, 32>}]} {
    %c0 = arith.constant 0 : index
    %c0_0 = arith.constant 0 : index
    %c0_1 = arith.constant 0 : index
    %0 = vector.load %arg2[%c0, %c0_0, %c0_1] : memref<1x128x4xbf16, #tpu.memory_space<vmem>>, vector<1x128x4xbf16>
    %1 = vector.shape_cast %0 : vector<1x128x4xbf16> to vector<128x4xbf16>
    %c0_2 = arith.constant 0 : index
    %c0_3 = arith.constant 0 : index
    %c0_4 = arith.constant 0 : index
    %2 = vector.load %arg3[%c0_2, %c0_3, %c0_4] : memref<1x256x4xbf16, #tpu.memory_space<vmem>>, vector<1x256x4xbf16>
    %3 = vector.shape_cast %2 : vector<1x256x4xbf16> to vector<256x4xbf16>
    %c0_5 = arith.constant 0 : index
    %c0_6 = arith.constant 0 : index
    %c0_7 = arith.constant 0 : index
    %4 = vector.load %arg4[%c0_5, %c0_6, %c0_7] : memref<1x256x32xbf16, #tpu.memory_space<vmem>>, vector<1x256x32xbf16>
    %5 = vector.shape_cast %4 : vector<1x256x32xbf16> to vector<256x32xbf16>
    %cst = arith.constant dense<0.000000e+00> : vector<128x256xf32>
    %6 = tpu.matmul %1, %3, %cst {dimension_numbers = #tpu.dot_dimension_numbers<[1], [1], [0], [0], [0, 0, 1, 0], [], []>} : vector<128x4xbf16>, vector<256x4xbf16>, vector<128x256xf32> -> vector<128x256xf32>
    %cst_8 = arith.constant dense<0xFF800000> : vector<128xf32>
    %7 = vector.multi_reduction <maximumf>, %6, %cst_8 [1] : vector<128x256xf32> to vector<128xf32>
    %8 = vector.shape_cast %7 : vector<128xf32> to vector<128x1xf32>
    %9 = vector.broadcast %8 : vector<128x1xf32> to vector<128x256xf32>
    %10 = arith.subf %6, %9 : vector<128x256xf32>
    %11 = math.exp %10 : vector<128x256xf32>
    %cst_9 = arith.constant dense<0.000000e+00> : vector<128xf32>
    %12 = vector.multi_reduction <add>, %11, %cst_9 [1] : vector<128x256xf32> to vector<128xf32>
    %13 = vector.shape_cast %12 : vector<128xf32> to vector<128x1xf32>
    %14 = arith.truncf %11 : vector<128x256xf32> to vector<128x256xbf16>
    %cst_10 = arith.constant dense<0.000000e+00> : vector<128x32xf32>
    %15 = tpu.matmul %14, %5, %cst_10 {dimension_numbers = #tpu.dot_dimension_numbers<[1], [0], [0], [1], [0, 0, 1, 1], [], []>} : vector<128x256xbf16>, vector<256x32xbf16>, vector<128x32xf32> -> vector<128x32xf32>
    %16 = tpu.reciprocal %13 {approx = true} : vector<128x1xf32> -> vector<128x1xf32>
    %17 = vector.broadcast %16 : vector<128x1xf32> to vector<128x32xf32>
    %18 = arith.mulf %15, %17 : vector<128x32xf32>
    %c0_11 = arith.constant 0 : index
    %c0_12 = arith.constant 0 : index
    %c0_13 = arith.constant 0 : index
    %19 = vector.load %arg5[%c0_11, %c0_12, %c0_13] : memref<1x128x32xf32, #tpu.memory_space<vmem>>, vector<1x128x32xf32>
    %20 = vector.shape_cast %19 : vector<1x128x32xf32> to vector<128x32xf32>
    %21 = vector.shape_cast %18 : vector<128x32xf32> to vector<1x128x32xf32>
    tpu.vector_store %arg5[%c0_11, %c0_12, %c0_13], %21 {strides = array<i32>} : memref<1x128x32xf32, #tpu.memory_space<vmem>>, vector<1x128x32xf32>,
    return
  }
  func.func @transform_0(%arg0: i32, %arg1: i32) -> (i32, i32, i32) {
    %c0_i32 = arith.constant 0 : i32
    %c0_i32_0 = arith.constant 0 : i32
    return %arg0, %arg1, %c0_i32 : i32, i32, i32
  }
  func.func @transform_1(%arg0: i32, %arg1: i32) -> (i32, i32, i32) {
    %c0_i32 = arith.constant 0 : i32
    %c0_i32_0 = arith.constant 0 : i32
    %c0_i32_1 = arith.constant 0 : i32
    return %arg0, %c0_i32, %c0_i32_0 : i32, i32, i32
  }
  func.func @transform_2(%arg0: i32, %arg1: i32) -> (i32, i32, i32) {
    %c0_i32 = arith.constant 0 : i32
    %c0_i32_0 = arith.constant 0 : i32
    %c0_i32_1 = arith.constant 0 : i32
    return %arg0, %c0_i32, %c0_i32_0 : i32, i32, i32
  }
  func.func @transform_3(%arg0: i32, %arg1: i32) -> (i32, i32, i32) {
    %c0_i32 = arith.constant 0 : i32
    %c0_i32_0 = arith.constant 0 : i32
    return %arg0, %arg1, %c0_i32 : i32, i32, i32
  }
}

</mosaic_0001>

<bundles_post_ra>
// kernel: tpu_custom_call.1
= control target key start
LH: loop header
LB: loop body
LE: loop exit
PB: predicated region body
PF: predicated region fallthrough
CT: control target
= control target key end

     0   :  { %s2548_s0 = inlined_call_operand.hbm [shape: bf16[2,256,4], index: 0, kind: input, shape index: {}]   ;;  %s2549_s1 = inlined_call_operand.hbm [shape: bf16[2,256,4], index: 1, kind: input, shape index: {}]   ;;  %s2550_s2 = inlined_call_operand.hbm [shape: bf16[2,256,32], index: 2, kind: input, shape index: {}]   ;;  %s2551_s3 = inlined_call_operand.hbm [shape: f32[2,256,32], index: 3, kind: output, shape index: {}]  }
   0x1   :  { %2573 = sst [smem:[#allocation21_spill]] %s2549_s1 }
   0x2   :  { %2574 = sst [smem:[#allocation22_spill]] %s2551_s3 }
   0x3   :  { %8 = vsyncpa [#allocation3], 0 }
   0x4   :  { %10 = vsyncpa [#allocation3 + $0x1], 0 }
   0x5   :  { %11 = vsyncpa [#allocation6], 0 }
   0x6   :  { %13 = vsyncpa [#allocation6 + $0x1], 0 }
   0x7   :  { %14 = vsyncpa [#allocation4], 0 }
   0x8   :  { %16 = vsyncpa [#allocation4 + $0x1], 0  ;;  %s1949_s12 = smov 0   ;;  %s1951_s13 = smov 0  }
   0x9   :  { %s1953_s14 = smov 0   ;;  %s1955_s15 = smov 0  }
   0xa   :  { %s1957_s16 = smov 0   ;;  %s1959_s17 = smov 0  }
   0xb   :  { %s1961_s18 = smov 0   ;;  %s1963_s19 = smov 0  }
   0xc   :  { %s1965_s20 = smov 0   ;;  %s1967_s21 = smov 0  }
   0xd   :  { %s1969_s22 = smov 0  }
   0xe LB: > { %2575 = sst [smem:[#allocation12_spill]] %s1883_s13  ;;  %s2003_s23 = sadd.s32 4294967295, %s1919_s22   ;;  %s1919_s22 = sphi %s1969_s22, %s22_s22   ;;  %s1915_s21 = sphi %s1967_s21, %s2627_s21   ;;  %s1911_s20 = sphi %s1965_s20, %s2626_s20   ;;  %s1907_s19 = sphi %s1963_s19, %s2625_s19   ;;  %s1903_s18 = sphi %s1961_s18, %s2624_s18   ;;  %s1899_s17 = sphi %s1959_s17, %s2623_s17   ;;  %s1895_s16 = sphi %s1957_s16, %s2622_s16   ;;  %s1891_s15 = sphi %s1955_s15, %s2621_s15   ;;  %s1887_s14 = sphi %s1953_s14, %s2620_s14   ;;  %s1883_s13 = sphi %s1951_s13, %s2619_s13   ;;  %s1879_s12 = sphi %s1949_s12, %s2617_s12  }
   0xf   : > { %2576 = sst [smem:[#allocation13_spill]] %s1891_s15  ;;  %p2554_p0 = scmp.eq.s32.totalorder %s1919_s22, 0 }
  0x10   : > { %2577 = sst [smem:[#allocation14_spill]] %s1903_s18  ;;  %p2553_p1 = scmp.eq.s32.totalorder %s2003_s23, 0 }
  0x11   : > { %2578 = sst [smem:[#allocation15_spill]] %s1907_s19  ;;  %p76_p2 = scmp.ne.s32.totalorder %s1887_s14, %s1883_s13 }
  0x12   : > { %2579 = sst [smem:[#allocation16_spill]] %s2003_s23  ;;  %p82_p3 = scmp.ne.s32.totalorder %s1883_s13, %s1879_s12 }
  0x13   : > { %p78_p4 = por %p76_p2, %p2554_p0  ;;  %p2552_p5 = scmp.lt.s32.totalorder %s1919_s22, 4 }
  0x14   : > { %p2016_p6 = por %p82_p3, %p2553_p1  ;;  %s183_s26 = sand.u32 1, %s1919_s22  }
  0x15   : > { %s185_s27 = sand.u32 1, %s1887_s14   ;;  %s1345_s29 = sshll.u32 %s1915_s21, 11 }
  0x16   : > { %s2580_s25 = scalar_select %p2016_p6, 1, 0 }
  0x17   : > { %s2022_s28 = sshll.u32 %s185_s27, 7  ;;  %s2582_s1 = sld [smem:[#allocation21_spill]] }
  0x18   : > { %2581 = sst [smem:[#allocation17_spill]] %s2580_s25  ;;  %s187_s6 = scalar_lea.vmem [#allocation5], %s2022_s28 }
  0x19   : > { %s194_s7 = sshll.u32 %s187_s6, 4  ;;  %p2035_p7 = pnand %p2552_p5, %p78_p4  ;;  %s2040_s7 = int_to_ptr.vmem [resolvable:$true] %s194_s7 }
  0x1a   : > { %s2042_s10 = scalar_lea.sflag [#allocation6], %s183_s26 }
  0x1b   : > { %p2555_p9 = pneg %p2035_p7 }
  0x1d   : > { %s2030_s5 = scalar_lea.hbm %s2582_s1, %s1345_s29  ;;  %s1708_s30 = scalar_lea.hbm %s2582_s1, 4096 }
  0x1e   : > { %s1703_s11 = scalar_lea.hbm %s2030_s5, 2048  ;;  %p1709_p12 = scmp.lt.u32.totalorder %s2030_s5, %s2582_s1 }
  0x1f   : > { %p1704_p8 = scmp.ne.s32.totalorder %s2030_s5, %s1703_s11  ;;  %p1710_p13 = scmp.lt.u32.totalorder %s1708_s30, %s1703_s11 }
  0x20   : > { %p1712_p3 = scmp.lt.u32.totalorder %s1703_s11, %s2030_s5 }
  0x21   : > { %p1706_p10 = pnand %p2555_p9, %p1704_p8  ;;  %p1711_p2 = por %p1710_p13, %p1709_p12 }
  0x23   : > { %p1707_p11 = pneg %p1706_p10  ;;  %p1713_p4 = por %p1712_p3, %p1711_p2 }
  0x25   : > { %p1714_p5 = pnand %p1713_p4, %p1707_p11 }
  0x27   : > { %1717 = shalt.err (!%p1714_p5)
}
  0x28   : > { %s1718_s26 = scalar_lea.vmem %s2040_s7, 2048  ;;  %s1921_s12 = smov [#allocation5]  }
  0x29   : > { %p1719_p8 = scmp.ne.s32.totalorder %s2040_s7, %s1718_s26  ;;  %s1723_s27 = sshll.u32 %s1921_s12, 4  ;;  %s1724_s27 = int_to_ptr.vmem [resolvable:$false] %s1723_s27 }
  0x2a   : > { %s1725_s4 = scalar_lea.vmem %s1724_s27, 4096  ;;  %p1726_p0 = scmp.lt.s32.totalorder %s2040_s7, %s1724_s27 }
  0x2b   : > { %p1721_p10 = pnand %p1719_p8, %p2555_p9  ;;  %p1727_p12 = scmp.lt.s32.totalorder %s1725_s4, %s1718_s26 }
  0x2d   : > { %p1722_p1 = pneg %p1721_p10  ;;  %p1728_p13 = por %p1727_p12, %p1726_p0 }
  0x2f   : > { %p1729_p2 = pnand %p1728_p13, %p1722_p1 }
  0x31   : > { %1732 = shalt.err (!%p1729_p2)
}
  0x32   : > { %s2556_s11 = smov 64   ;;  %s2558_s30 = smov 4  }
  0x33   : > { %1465 = dma.hbm_to_vmem [thread:$0]  (!%p2035_p7), %s2030_s5, 2048, %s2040_s7, %s2042_s10, %s2556_s11, %s2556_s11, %s2558_s30  }
  0x34   : > { %s2078_s12 = scalar_lea.hbm %s2550_s2, %s1345_s29  ;;  %p1286_p0 = scmp.ge.s32.totalorder %s1919_s22, 1 }
  0x35   : > { %s208_s27 = scalar_lea.vmem [#allocation7], %s2022_s28  ;;  %p223_p1 = scmp.lt.s32.totalorder %s1919_s22, 5 }
  0x36   : > { %s2082_s4 = sshll.u32 %s208_s27, 4  ;;  %s1273_s24 = sadd.s32 4294967294, %s1919_s22   ;;  %s2150_s4 = int_to_ptr.vmem [resolvable:$true] %s2082_s4 }
  0x37   : > { %p2085_p5 = pnand %p1286_p0, %p223_p1  ;;  %s31_s5 = sadd.s32 1, %s1911_s20 }
  0x38   : > { %s43_s7 = sadd.s32 1, %s1899_s17  ;;  %p32_p11 = scmp.ge.s32.totalorder %s31_s5, 2 }
  0x39   : > { %s2584_s9 = scalar_select %p2085_p5, 1, 0 }
  0x3a   : > { %p50_p3 = scmp.ne.s32.totalorder %s1899_s17, %s1895_s16  ;;  %p56_p4 = scmp.ne.s32.totalorder %s1895_s16, %s1891_s15 }
  0x3b   : > { %p134_p8 = scmp.eq.s32.totalorder %s2003_s23, 3  ;;  %s2629_s5 = smov (%p32_p11, %s31_s5), 0 }
  0x3c   : > { %2585 = sst [smem:[#allocation18_spill]] %s2629_s5  ;;  %s2586_s28 = sadd.s32 1, %s1915_s21 }
  0x3d   : > { %s2631_s28 = smov (!%p32_p11, %s2586_s28), %s1915_s21  ;;  %s39_s29 = ssub.s32 %s1911_s20, %s2629_s5 }
  0x3e   : > { %p2587_p10 = scmp.eq.s32.totalorder %s1919_s22, 0  ;;  %p36_p13 = scmp.ge.s32.totalorder %s2631_s28, 2 }
  0x3f   : > { %p2589_p2 = scmp.eq.s32.totalorder %s2003_s23, 0  ;;  %p2116_p1 = por %p134_p8, %p50_p3 }
  0x40   : > { %p2106_p12 = por %p2587_p10, %p50_p3  ;;  %p140_p11 = scmp.eq.s32.totalorder %s1273_s24, 3 }
  0x41   : > { %p2112_p0 = por %p2589_p2, %p56_p4  ;;  %s2633_s28 = smov (%p36_p13, %s2631_s28), 0 }
  0x42   : > { %s2591_s27 = scalar_select %p2116_p1, 1, 0 }
  0x43   : > { %s2590_s26 = scalar_select %p2112_p0, 1, 0 }
  0x44   : > { %2592 = sst [smem:[#allocation19_spill]] %s2591_s27  ;;  %p2122_p9 = por %p140_p11, %p56_p4 }
  0x45   : > { %s160_s30 = sand.u32 1, %s1899_s17   ;;  %s38_s1 = ssub.s32 %s1915_s21, %s2633_s28 }
  0x46   : > { %s2593_s11 = scalar_select %p2122_p9, 1, 0 }
  0x47   : > { %s40_s5 = sor.u32 %s39_s29, %s38_s1  ;;  %p67_p10 = scmp.eq.s32.totalorder %s38_s1, 0 }
  0x48   : > { %2594 = sst [smem:[#allocation20_spill]] %s2593_s11  ;;  %p41_p2 = scmp.eq.s32.totalorder %s40_s5, 0 }
  0x49   : > { %s1276_s15 = sshll.u32 %s160_s30, 6  ;;  %s2595_s3 = sadd.s32 1, %s1887_s14 }
  0x4a   : > { %s2132_s19 = scalar_select %p67_p10, %s1887_s14, %s2595_s3  }
  0x4b   : > { %s2135_s24 = scalar_select %p41_p2, %s1899_s17, %s43_s7  }
  0x4c   : > { %s1277_s27 = sshll.u32 %s1911_s20, 4  ;;  %s1278_s18 = sshll.u32 %s1915_s21, 5 }
  0x4d   : > { %s164_s25 = scalar_lea.vmem [#allocation2], %s1276_s15  ;;  %s170_s23 = sadd.s32 %s1278_s18, %s1277_s27 }
  0x4e   : > { %s173_s13 = sshll.u32 %s164_s25, 4  ;;  %s1279_s11 = sshll.u32 %s170_s23, 6  ;;  %s2139_s13 = int_to_ptr.vmem [resolvable:$true] %s173_s13 }
  0x4f   : > { %p2596_p3 = scmp.lt.s32.totalorder %s1919_s22, 4  ;;  %s2155_s5 = scalar_lea.hbm %s2548_s0, %s1279_s11 }
  0x50   : > { %s2157_s15 = scalar_lea.sflag [#allocation3], %s160_s30  ;;  %s1733_s18 = scalar_lea.hbm %s2155_s5, 1024 }
  0x51   : > { %p2145_p4 = pnand %p2596_p3, %p2106_p12  ;;  %p1734_p8 = scmp.ne.s32.totalorder %s2155_s5, %s1733_s18 }
  0x52   : > { %s1738_s7 = scalar_lea.hbm %s2548_s0, 4096  ;;  %p1739_p10 = scmp.lt.u32.totalorder %s2155_s5, %s2548_s0 }
  0x53   : > { %p1735_p12 = pneg %p2145_p4  ;;  %p1740_p2 = scmp.lt.u32.totalorder %s1738_s7, %s1733_s18 }
  0x54   : > { %p1742_p9 = scmp.lt.u32.totalorder %s1733_s18, %s2155_s5 }
  0x55   : > { %p1736_p13 = pnand %p1735_p12, %p1734_p8  ;;  %p1741_p3 = por %p1740_p2, %p1739_p10 }
  0x57   : > { %p1737_p11 = pneg %p1736_p13  ;;  %p1743_p1 = por %p1742_p9, %p1741_p3 }
  0x59   : > { %p1744_p6 = pnand %p1743_p1, %p1737_p11 }
  0x5b   : > { %1747 = shalt.err (!%p1744_p6)
}
  0x5c   : > { %s1748_s30 = scalar_lea.vmem %s2139_s13, 1024  ;;  %s1924_s27 = smov [#allocation2]  }
  0x5d   : > { %p1749_p8 = scmp.ne.s32.totalorder %s2139_s13, %s1748_s30  ;;  %s1753_s1 = sshll.u32 %s1924_s27, 4  ;;  %s1754_s1 = int_to_ptr.vmem [resolvable:$false] %s1753_s1 }
  0x5e   : > { %s1755_s3 = scalar_lea.vmem %s1754_s1, 2048  ;;  %p1756_p5 = scmp.lt.s32.totalorder %s2139_s13, %s1754_s1 }
  0x5f   : > { %p1751_p13 = pnand %p1749_p8, %p1735_p12  ;;  %p1757_p10 = scmp.lt.s32.totalorder %s1755_s3, %s1748_s30 }
  0x61   : > { %p1752_p0 = pneg %p1751_p13  ;;  %p1758_p2 = por %p1757_p10, %p1756_p5 }
  0x63   : > { %p1759_p9 = pnand %p1758_p2, %p1752_p0 }
  0x65   : > { %1762 = shalt.err (!%p1759_p9)
}
  0x66   : > { %s2598_s18 = smov 4   ;;  %s2599_s23 = smov 64  }
  0x67   : > { %1462 = dma.hbm_to_vmem [thread:$0]  (!%p2145_p4), %s2155_s5, 1024, %s2139_s13, %s2157_s15, %s2599_s23, %s2599_s23, %s2598_s18  }
  0x68   : > { %s1763_s25 = scalar_lea.hbm %s2078_s12, 2048  ;;  %p2600_p5 = pneg %p2035_p7 }
  0x69   : > { %p1764_p6 = scmp.ne.s32.totalorder %s2078_s12, %s1763_s25  ;;  %s1768_s11 = scalar_lea.hbm %s2550_s2, 4096 }
  0x6a   : > { %p1769_p12 = scmp.lt.u32.totalorder %s2078_s12, %s2550_s2  ;;  %p1770_p11 = scmp.lt.u32.totalorder %s1768_s11, %s1763_s25 }
  0x6b   : > { %p1766_p0 = pnand %p1764_p6, %p2600_p5  ;;  %p1772_p8 = scmp.lt.u32.totalorder %s1763_s25, %s2078_s12 }
  0x6c   : > { %p1771_p3 = por %p1770_p11, %p1769_p12 }
  0x6d   : > { %p1767_p1 = pneg %p1766_p0 }
  0x6e   : > { %p1773_p13 = por %p1772_p8, %p1771_p3 }
  0x70   : > { %p1774_p10 = pnand %p1773_p13, %p1767_p1 }
  0x72   : > { %1777 = shalt.err (!%p1774_p10)
}
  0x73   : > { %s1778_s13 = scalar_lea.vmem %s2150_s4, 2048  ;;  %p2601_p2 = pmov %p2600_p5 }
  0x74   : > { %p1779_p4 = scmp.ne.s32.totalorder %s2150_s4, %s1778_s13  ;;  %s1925_s5 = smov [#allocation7]  }
  0x75   : > { %s1783_s15 = sshll.u32 %s1925_s5, 4  ;;  %s1784_s15 = int_to_ptr.vmem [resolvable:$false] %s1783_s15 }
  0x76   : > { %p1781_p9 = pnand %p1779_p4, %p2601_p2  ;;  %s1785_s27 = scalar_lea.vmem %s1784_s15, 4096 }
  0x77   : > { %p1786_p5 = scmp.lt.s32.totalorder %s2150_s4, %s1784_s15  ;;  %p1787_p0 = scmp.lt.s32.totalorder %s1785_s27, %s1778_s13 }
  0x78   : > { %p1782_p6 = pneg %p1781_p9 }
  0x79   : > { %p1788_p12 = por %p1787_p0, %p1786_p5 }
  0x7b   : > { %p1789_p11 = pnand %p1788_p12, %p1782_p6 }
  0x7d   : > { %1792 = shalt.err (!%p1789_p11)
}
  0x7e   : > { %1468 = dma.hbm_to_vmem [thread:$0]  (!%p2035_p7), %s2078_s12, 2048, %s2150_s4, %s2042_s10, %s2599_s23, %s2599_s23, %s2598_s18  }
  0x7f   : > { %p2602_p1 = scmp.ne.s32.totalorder %s2584_s9, 0 }
  0x80   : > { %s2218_s1 = sand.u32 (!%p2602_p1), 1, %s1895_s16   ;;  %p2603_p3 = scmp.ne.s32.totalorder (!%p2602_p1), %s2590_s26, 0 }
  0x81   : > { %227 = sbr.rel (%p2602_p1) target bundleno = 884 (0x374), region = 32  ;;  %s1287_s3 = sshll.u32 (!%p2602_p1), %s2218_s1, 6 }
  0x82   : > { %s230_s25 = scalar_lea.sflag (!%p2602_p1), [#allocation3], %s2218_s1  ;;  %s2222_s7 = scalar_lea.vmem (!%p2602_p1), [#allocation2], %s1287_s3 }
  0x88   : > { %1866 = dma.done.wait (%p2603_p3), %s230_s25, 1024  }
  0x89   : > { %1868 = vsyncadd (%p2603_p3), %s230_s25, 4294966272  ;;  %s2604_s8 = sld [smem:[#allocation16_spill]]  ;;  %s2605_s10 = sld [smem:[#allocation12_spill]] }
  0x8a   : > { %s2606_s12 = sld [smem:[#allocation17_spill]] }
  0x8f   : > { %s238_s9 = sand.u32 1, %s2604_s8   ;;  %s240_s4 = sand.u32 1, %s2605_s10  }
  0x90   : > { %s2230_s18 = sshll.u32 %s240_s4, 7  ;;  %s239_s23 = scalar_lea.sflag [#allocation6], %s238_s9 }
  0x91   : > { %s2233_s29 = scalar_lea.vmem [#allocation5], %s2230_s18  ;;  %p2607_p7 = scmp.ne.s32.totalorder %s2606_s12, 0 }
  0x93   : > { %1870 = dma.done.wait (%p2607_p7), %s239_s23, 4096  }
  0x94   : > { %1872 = vsyncadd (%p2607_p7), %s239_s23, 4294963200  ;;  %vm487_vm0 = vcmask 31744   ;;  %v1567_v0 = vld [vmem:[%s2233_s29 + $0x40] sm:$0xff]   ;;  %v1569_v2 = vld [vmem:[%s2233_s29 + $0x48] sm:$0xff]   ;;  %s2296_s26 = scalar_lea.vmem [#allocation7], %s2230_s18  ;;  %s1290_s11 = sshll.u32 %s2218_s1, 7 }
  0x95   : > { %v1568_v1 = vld [vmem:[%s2233_s29] sm:$0xff]   ;;  %1443 = vmatprep.subr.msk.bf16.mxu0 %vm487_vm0, %v1567_v0  ;;  %v1570_v4 = vld [vmem:[%s2233_s29 + $0x8] sm:$0xff]   ;;  %v1571_v6 = vld [vmem:[%s2233_s29 + $0x50] sm:$0xff]   ;;  %vm1106_vm1 = vcmask 261120   ;;  %s2443_s6 = scalar_lea.vmem [#allocation8], %s1290_s11  ;;  %s2608_s30 = sld [smem:[#allocation14_spill]] }
  0x96   : > { %v513_v3 = vsel %vm487_vm0, %v1568_v1, 0  ;;  %v516_v5 = vsel %vm487_vm0, %v1570_v4, 0  ;;  %v1572_v7 = vld [vmem:[%s2233_s29 + $0x10] sm:$0xff]   ;;  %v1583_v8 = vld [vmem:[%s2222_s7] sm:$0xff]   ;;  %v1573_v10 = vld [vmem:[%s2233_s29 + $0x58] sm:$0xff]   ;;  %s2609_s13 = sld [smem:[#allocation15_spill]] }
  0x97   : > { %1348 = vmatpush3.bf16.xpose.msra.mxu0 %v513_v3  ;;  %v519_v9 = vsel %vm487_vm0, %v1572_v7, 0  ;;  %1363 = vmatprep.mubr.msk.bf16.mxu0 %vm487_vm0, %v1583_v8  ;;  %v1574_v11 = vld [vmem:[%s2233_s29 + $0x18] sm:$0xff]   ;;  %v1575_v13 = vld [vmem:[%s2233_s29 + $0x60] sm:$0xff]   ;;  %v1577_v16 = vld [vmem:[%s2233_s29 + $0x68] sm:$0xff]   ;;  %s2610_s3 = sld [smem:[#allocation19_spill]]  ;;  %s1124_s18 = scalar_lea.sflag [#allocation4], %s2218_s1 }
  0x98   : > { %1444 = vmatprep.subr.msk.bf16.mxu0 %vm487_vm0, %v1569_v2  ;;  %v522_v12 = vsel %vm487_vm0, %v1574_v11, 0  ;;  %v1576_v14 = vld [vmem:[%s2233_s29 + $0x20] sm:$0xff]   ;;  %v1578_v17 = vld [vmem:[%s2233_s29 + $0x28] sm:$0xff]   ;;  %v1579_v19 = vld [vmem:[%s2233_s29 + $0x70] sm:$0xff]   ;;  %s2611_s12 = sld [smem:[#allocation22_spill]] }
  0x99   : > { %v525_v15 = vsel %vm487_vm0, %v1576_v14, 0  ;;  %v528_v18 = vsel %vm487_vm0, %v1578_v17, 0  ;;  %v1580_v20 = vld [vmem:[%s2233_s29 + $0x30] sm:$0xff]   ;;  %v1581_v22 = vld [vmem:[%s2233_s29 + $0x78] sm:$0xff]   ;;  %v1584_v25 = vld [vmem:[%s2222_s7 + $0x8] sm:$0xff]  }
  0x9a   : > { %v531_v21 = vsel %vm487_vm0, %v1580_v20, 0  ;;  %v1582_v23 = vld [vmem:[%s2233_s29 + $0x38] sm:$0xff]   ;;  %v1585_v26 = vld [vmem:[%s2222_s7 + $0x10] sm:$0xff]   ;;  %v1587_v28 = vld [vmem:[%s2222_s7 + $0x20] sm:$0xff]   ;;  %s1926_s29 = smov [#allocation8]  }
  0x9b   : > { %v534_v24 = vsel %vm487_vm0, %v1582_v23, 0  ;;  %v1586_v27 = vld [vmem:[%s2222_s7 + $0x18] sm:$0xff]   ;;  %v1588_v29 = vld [vmem:[%s2222_s7 + $0x28] sm:$0xff]   ;;  %v1589_v30 = vld [vmem:[%s2222_s7 + $0x30] sm:$0xff]   ;;  %s1340_s5 = sshll.u32 %s2608_s30, 4 }
  0x9c   : > { %v1590_v31 = vld [vmem:[%s2222_s7 + $0x38] sm:$0xff]   ;;  %v1591_v32 = vld [vmem:[%s2296_s26 + $0x40] sm:$0xff]   ;;  %v1593_v34 = vld [vmem:[%s2296_s26 + $0x48] sm:$0xff]   ;;  %s1341_s15 = sshll.u32 %s2609_s13, 5  ;;  %s1139_s7 = sshll.u32 %s2443_s6, 4  ;;  %s2481_s7 = int_to_ptr.vmem [resolvable:$true] %s1139_s7 }
  0x9d   : > { %v1592_v33 = vld [vmem:[%s2296_s26] sm:$0xff]   ;;  %1379 = vmatprep.subr.bf16.mxu1 %v1591_v32  ;;  %v1594_v35 = vld [vmem:[%s2296_s26 + $0x8] sm:$0xff]   ;;  %v1595_v36 = vld [vmem:[%s2296_s26 + $0x50] sm:$0xff]   ;;  %s1136_s27 = sadd.s32 %s1341_s15, %s1340_s5  ;;  %s1793_s23 = scalar_lea.vmem %s2481_s7, 2048 }
  0x9e   : > { %1380 = vmatpush3.bf16.msra.mxu1 %v1592_v33  ;;  %v1596_v37 = vld [vmem:[%s2296_s26 + $0x10] sm:$0xff]   ;;  %v1597_v55 = vld [vmem:[%s2296_s26 + $0x58] sm:$0xff]   ;;  %v1599_v58 = vld [vmem:[%s2296_s26 + $0x60] sm:$0xff]   ;;  %s1342_s25 = sshll.u32 %s1136_s27, 7  ;;  %s2612_s9 = smov %s2611_s12 }
  0x9f   : > { %1350 = vmatpush3.bf16.xpose.msra.mxu0 %v516_v5  ;;  %1381 = vmatprep.subr.bf16.mxu1 %v1593_v34  ;;  %v1598_v57 = vld [vmem:[%s2296_s26 + $0x18] sm:$0xff]   ;;  %v1600_v60 = vld [vmem:[%s2296_s26 + $0x20] sm:$0xff]   ;;  %v1601_v1 = vld [vmem:[%s2296_s26 + $0x68] sm:$0xff]   ;;  %s2479_s4 = scalar_lea.hbm %s2611_s12, %s1342_s25  ;;  %p1794_p8 = scmp.ne.s32.totalorder %s2481_s7, %s1793_s23 }
  0xa0   : > { %1445 = vmatprep.subr.msk.bf16.mxu0 %vm487_vm0, %v1571_v6  ;;  %v1602_v3 = vld [vmem:[%s2296_s26 + $0x28] sm:$0xff]   ;;  %v1603_v4 = vld [vmem:[%s2296_s26 + $0x70] sm:$0xff]   ;;  %v1605_v11 = vld [vmem:[%s2296_s26 + $0x78] sm:$0xff]   ;;  %p2613_p13 = scmp.ne.s32.totalorder %s2610_s3, 0 }
  0xa1   : > { %v1604_v6 = vld [vmem:[%s2296_s26 + $0x30] sm:$0xff]  }
  0xa2   : > { %1382 = vmatpush3.bf16.msra.mxu1 %v1594_v35  ;;  %p1795_p10 = pnand %p1794_p8, %p2613_p13 }
  0xa3   : > { %1383 = vmatprep.subr.bf16.mxu1 %v1595_v36 }
  0xa4   : > { %p1796_p4 = pneg %p1795_p10 }
  0xa6   : > { %1384 = vmatpush3.bf16.msra.mxu1 %v1596_v37 }
  0xa7   : > { %1352 = vmatpush3.bf16.xpose.msra.mxu0 %v519_v9  ;;  %1385 = vmatprep.subr.bf16.mxu1 %v1597_v55 }
  0xa8   : > { %1446 = vmatprep.subr.msk.bf16.mxu0 %vm487_vm0, %v1573_v10 }
  0xaa   : > { %1386 = vmatpush3.bf16.msra.mxu1 %v1598_v57 }
  0xab   : > { %1387 = vmatprep.subr.bf16.mxu1 %v1599_v58 }
  0xae   : > { %1388 = vmatpush3.bf16.msra.mxu1 %v1600_v60 }
  0xaf   : > { %1354 = vmatpush3.bf16.xpose.msra.mxu0 %v522_v12  ;;  %1389 = vmatprep.subr.bf16.mxu1 %v1601_v1 }
  0xb0   : > { %1447 = vmatprep.subr.msk.bf16.mxu0 %vm487_vm0, %v1575_v13  ;;  %v1606_v13 = vld [vmem:[%s2296_s26 + $0x38] sm:$0xff]   ;;  %s1797_s26 = sshll.u32 %s1926_s29, 4  ;;  %s1798_s26 = int_to_ptr.vmem [resolvable:$false] %s1797_s26 }
  0xb1   : > { %s1799_s11 = scalar_lea.vmem %s1798_s26, 4096  ;;  %p1800_p2 = scmp.lt.s32.totalorder %s2481_s7, %s1798_s26 }
  0xb2   : > { %1390 = vmatpush3.bf16.msra.mxu1 %v1602_v3  ;;  %p1801_p9 = scmp.lt.s32.totalorder %s1799_s11, %s1793_s23 }
  0xb3   : > { %1391 = vmatprep.subr.bf16.mxu1 %v1603_v4 }
  0xb4   : > { %p1802_p6 = por %p1801_p9, %p1800_p2 }
  0xb6   : > { %1392 = vmatpush3.bf16.msra.mxu1 %v1604_v6  ;;  %p1803_p5 = pnand %p1802_p6, %p1796_p4 }
  0xb7   : > { %1356 = vmatpush3.bf16.xpose.msra.mxu0 %v525_v15  ;;  %1393 = vmatprep.subr.bf16.mxu1 %v1605_v11 }
  0xb8   : > { %1448 = vmatprep.subr.msk.bf16.mxu0 %vm487_vm0, %v1577_v16 }
  0xba   : > { %1394 = vmatpush3.bf16.msra.mxu1 %v1606_v13 }
  0xbf   : > { %1358 = vmatpush3.bf16.xpose.msra.mxu0 %v528_v18 }
  0xc0   : > { %1449 = vmatprep.subr.msk.bf16.mxu0 %vm487_vm0, %v1579_v19 }
  0xc7   : > { %1360 = vmatpush3.bf16.xpose.msra.mxu0 %v531_v21 }
  0xc8   : > { %1450 = vmatprep.subr.msk.bf16.mxu0 %vm487_vm0, %v1581_v22 }
  0xcf   : > { %1362 = vmatpush3.bf16.xpose.msra.mxu0 %v534_v24 }
  0xd6   : > { %1364 = vmatmul.mubr.msk.bf16.vlgmr.msra.gmra.mrb[0].mxu0 %vm487_vm0, %v1583_v8 }
  0xd7   : > { %1365 = vmatprep.mubr.msk.bf16.mxu0 %vm487_vm0, %v1584_v25 }
  0xde   : > { %1366 = vmatmul.mubr.msk.bf16.gmra.mrb[4].mxu0 %vm487_vm0, %v1584_v25 }
  0xdf   : > { %1367 = vmatprep.mubr.msk.bf16.mxu0 %vm487_vm0, %v1585_v26 }
  0xe6   : > { %1368 = vmatmul.mubr.msk.bf16.gmra.mrb[8].mxu0 %vm487_vm0, %v1585_v26 }
  0xe7   : > { %1369 = vmatprep.mubr.msk.bf16.mxu0 %vm487_vm0, %v1586_v27 }
  0xee   : > { %1370 = vmatmul.mubr.msk.bf16.gmra.mrb[12].mxu0 %vm487_vm0, %v1586_v27 }
  0xef   : > { %1371 = vmatprep.mubr.msk.bf16.mxu0 %vm487_vm0, %v1587_v28 }
  0xf6   : > { %1372 = vmatmul.mubr.msk.bf16.gmra.mrb[16].mxu0 %vm487_vm0, %v1587_v28 }
  0xf7   : > { %1373 = vmatprep.mubr.msk.bf16.mxu0 %vm487_vm0, %v1588_v29 }
  0xfe   : > { %1374 = vmatmul.mubr.msk.bf16.gmra.mrb[20].mxu0 %vm487_vm0, %v1588_v29 }
  0xff   : > { %1375 = vmatprep.mubr.msk.bf16.mxu0 %vm487_vm0, %v1589_v30 }
 0x106   : > { %1376 = vmatmul.mubr.msk.bf16.gmra.mrb[24].mxu0 %vm487_vm0, %v1589_v30 }
 0x107   : > { %1377 = vmatprep.mubr.msk.bf16.mxu0 %vm487_vm0, %v1590_v31 }
 0x10e   : > { %1378 = vmatmul.mubr.msk.bf16.gmra.mrb[28].mxu0 %vm487_vm0, %v1590_v31 }
 0x1a9   : > { %v2304_v38 = vpop.f32.mrb[0].mxu0 }
 0x1aa   : > { %v2306_v39 = vpop.f32.mrb[1].mxu0 }
 0x1ab   : > { %v2308_v40 = vpop.f32.mrb[2].mxu0  ;;  %v673_v41 = vmax.f32 %v2304_v38, %v2306_v39 }
 0x1ac   : > { %v2312_v42 = vpop.f32.mrb[3].mxu0 }
 0x1ad   : > { %674 = vmax.xlane.f32.xlu0 %v673_v41  ;;  %v676_v43 = vmax.f32 %v2308_v40, %v2312_v42 }
 0x1b1   : > { %677 = vmax.xlane.f32.xlu0 %v676_v43  ;;  %v2316_v44 = vpop.f32.mrb[4].mxu0 }
 0x1b2   : > { %v2318_v45 = vpop.f32.mrb[5].mxu0 }
 0x1b3   : > { %v2320_v46 = vpop.f32.mrb[6].mxu0  ;;  %v679_v47 = vmax.f32 %v2316_v44, %v2318_v45 }
 0x1b4   : > { %v2324_v48 = vpop.f32.mrb[7].mxu0 }
 0x1b5   : > { %680 = vmax.xlane.f32.xlu1 %v679_v47  ;;  %v682_v49 = vmax.f32 %v2320_v46, %v2324_v48 }
 0x1b9   : > { %683 = vmax.xlane.f32.xlu1 %v682_v49  ;;  %v2328_v50 = vpop.f32.mrb[8].mxu0 }
 0x1ba   : > { %v2330_v51 = vpop.f32.mrb[9].mxu0 }
 0x1bb   : > { %v2332_v52 = vpop.f32.mrb[10].mxu0  ;;  %v685_v53 = vmax.f32 %v2328_v50, %v2330_v51 }
 0x1bc   : > { %v2336_v54 = vpop.f32.mrb[11].mxu0 }
 0x1bd   : > { %686 = vmax.xlane.f32.xlu0 %v685_v53  ;;  %v688_v56 = vmax.f32 %v2332_v52, %v2336_v54 }
 0x1bf   : > { %689 = vmax.xlane.f32.xlu1 %v688_v56 }
 0x1c1   : > { %v2343_v59 = vpop.f32.mrb[12].mxu0 }
 0x1c2   : > { %v2346_v61 = vpop.f32.mrb[13].mxu0 }
 0x1c3   : > { %v2348_v62 = vpop.f32.mrb[14].mxu0  ;;  %v691_v63 = vmax.f32 %v2343_v59, %v2346_v61 }
 0x1c4   : > { %v2352_v0 = vpop.f32.mrb[15].mxu0 }
 0x1c5   : > { %692 = vmax.xlane.f32.xlu0 %v691_v63  ;;  %v694_v2 = vmax.f32 %v2348_v62, %v2352_v0 }
 0x1c7   : > { %695 = vmax.xlane.f32.xlu1 %v694_v2 }
 0x1c9   : > { %v2359_v5 = vpop.f32.mrb[16].mxu0 }
 0x1ca   : > { %v2362_v7 = vpop.f32.mrb[17].mxu0 }
 0x1cb   : > { %v2364_v8 = vpop.f32.mrb[18].mxu0  ;;  %v697_v9 = vmax.f32 %v2359_v5, %v2362_v7 }
 0x1cc   : > { %v2368_v10 = vpop.f32.mrb[19].mxu0 }
 0x1cd   : > { %698 = vmax.xlane.f32.xlu0 %v697_v9  ;;  %v700_v12 = vmax.f32 %v2364_v8, %v2368_v10 }
 0x1cf   : > { %701 = vmax.xlane.f32.xlu1 %v700_v12 }
 0x1d1   : > { %v2374_v14 = vpop.f32.mrb[20].mxu0 }
 0x1d2   : > { %v2376_v15 = vpop.f32.mrb[21].mxu0 }
 0x1d3   : > { %v2378_v16 = vpop.f32.mrb[22].mxu0  ;;  %v703_v17 = vmax.f32 %v2374_v14, %v2376_v15 }
 0x1d4   : > { %v2382_v18 = vpop.f32.mrb[23].mxu0 }
 0x1d5   : > { %704 = vmax.xlane.f32.xlu0 %v703_v17  ;;  %v706_v19 = vmax.f32 %v2378_v16, %v2382_v18 }
 0x1d7   : > { %707 = vmax.xlane.f32.xlu1 %v706_v19 }
 0x1d9   : > { %v2386_v20 = vpop.f32.mrb[24].mxu0 }
 0x1da   : > { %v2388_v21 = vpop.f32.mrb[25].mxu0 }
 0x1db   : > { %v2390_v22 = vpop.f32.mrb[26].mxu0  ;;  %v709_v23 = vmax.f32 %v2386_v20, %v2388_v21 }
 0x1dc   : > { %v2394_v24 = vpop.f32.mrb[27].mxu0 }
 0x1dd   : > { %710 = vmax.xlane.f32.xlu0 %v709_v23  ;;  %v712_v25 = vmax.f32 %v2390_v22, %v2394_v24 }
 0x1df   : > { %713 = vmax.xlane.f32.xlu1 %v712_v25 }
 0x1e1   : > { %v2398_v26 = vpop.f32.mrb[28].mxu0 }
 0x1e2   : > { %v2400_v27 = vpop.f32.mrb[29].mxu0 }
 0x1e3   : > { %v2402_v28 = vpop.f32.mrb[30].mxu0  ;;  %v715_v29 = vmax.f32 %v2398_v26, %v2400_v27 }
 0x1e4   : > { %v2406_v30 = vpop.f32.mrb[31].mxu0 }
 0x1e5   : > { %v718_v31 = vmax.f32 %v2402_v28, %v2406_v30  ;;  %716 = vmax.xlane.f32.xlu0 %v715_v29 }
 0x1e7   : > { %719 = vmax.xlane.f32.xlu1 %v718_v31 }
 0x23a   : > { %v675_v32 = vpop.xlane.xlu0 %674 }
 0x23b   : > { %v721_v33 = vsub.f32 %v2304_v38, %v675_v32  ;;  %v722_v34 = vsub.f32 %v2306_v39, %v675_v32 }
 0x23d   : > { %v753_v35 = vmul.f32 1.442695, %v721_v33  ;;  %v755_v36 = vmul.f32 1.442695, %v722_v34 }
 0x23e   : > { %v678_v37 = vpop.xlane.xlu0 %677 }
 0x23f   : > { %1607 = vpow2.f32 %v753_v35  ;;  %v723_v41 = vsub.f32 %v2308_v40, %v678_v37  ;;  %v724_v43 = vsub.f32 %v2312_v42, %v678_v37 }
 0x240   : > { %1609 = vpow2.f32 %v755_v36 }
 0x241   : > { %v757_v47 = vmul.f32 1.442695, %v723_v41  ;;  %v759_v49 = vmul.f32 1.442695, %v724_v43 }
 0x242   : > { %v681_v53 = vpop.xlane.xlu1 %680 }
 0x243   : > { %1611 = vpow2.f32 %v757_v47  ;;  %v725_v55 = vsub.f32 %v2316_v44, %v681_v53  ;;  %v726_v56 = vsub.f32 %v2318_v45, %v681_v53 }
 0x244   : > { %1613 = vpow2.f32 %v759_v49 }
 0x245   : > { %v761_v38 = vmul.f32 1.442695, %v725_v55  ;;  %v763_v39 = vmul.f32 1.442695, %v726_v56 }
 0x246   : > { %v684_v57 = vpop.xlane.xlu1 %683 }
 0x247   : > { %1615 = vpow2.f32 %v761_v38  ;;  %v727_v58 = vsub.f32 %v2320_v46, %v684_v57  ;;  %v728_v40 = vsub.f32 %v2324_v48, %v684_v57 }
 0x248   : > { %1617 = vpow2.f32 %v763_v39 }
 0x249   : > { %v1608_v42 = vpop.eup %1607  ;;  %v765_v60 = vmul.f32 1.442695, %v727_v58  ;;  %v767_v63 = vmul.f32 1.442695, %v728_v40 }
 0x24a   : > { %v1610_v1 = vpop.eup %1609  ;;  %v687_v2 = vpop.xlane.xlu0 %686 }
 0x24b   : > { %1619 = vpow2.f32 %v765_v60  ;;  %v729_v44 = vsub.f32 %v2328_v50, %v687_v2  ;;  %v730_v45 = vsub.f32 %v2330_v51, %v687_v2  ;;  %v817_v3 = vadd.f32 %v1610_v1, %v1608_v42 }
 0x24c   : > { %1621 = vpow2.f32 %v767_v63  ;;  %v690_v4 = vpop.xlane.xlu1 %689 }
 0x24d   : > { %v1612_v6 = vpop.eup %1611  ;;  %v769_v9 = vmul.f32 1.442695, %v729_v44  ;;  %v771_v11 = vmul.f32 1.442695, %v730_v45  ;;  %v731_v46 = vsub.f32 %v2332_v52, %v690_v4  ;;  %v732_v48 = vsub.f32 %v2336_v54, %v690_v4  ;;  %818 = vadd.xlane.f32.xlu0 %v817_v3 }
 0x24e   : > { %v1614_v12 = vpop.eup %1613  ;;  %v865_v13 = vpack.c.bf16 %v1612_v6, %v1608_v42 }
 0x24f   : > { %1623 = vpow2.f32 %v769_v9  ;;  %v773_v17 = vmul.f32 1.442695, %v731_v46  ;;  %v775_v19 = vmul.f32 1.442695, %v732_v48  ;;  %v866_v23 = vpack.c.bf16 %v1614_v12, %v1610_v1 }
 0x250   : > { %1625 = vpow2.f32 %v771_v11  ;;  %v820_v50 = vadd.f32 %v1614_v12, %v1612_v6 }
 0x251   : > { %v1616_v51 = vpop.eup %1615  ;;  %1627 = vpow2.f32 %v773_v17  ;;  %1009 = vmatprep.mubr.bf16.mxu1 %v866_v23 }
 0x252   : > { %v1618_v25 = vpop.eup %1617  ;;  %1629 = vpow2.f32 %v775_v19  ;;  %821 = vadd.xlane.f32.xlu1 %v820_v50  ;;  %1010 = vmatmul.mubr.bf16.vlgmr.msra.gmra.mrb[0].mxu1 %v865_v13  ;;  %v693_v29 = vpop.xlane.xlu0 %692 }
 0x253   : > { %v733_v52 = vsub.f32 %v2343_v59, %v693_v29  ;;  %v734_v54 = vsub.f32 %v2346_v61, %v693_v29  ;;  %v823_v31 = vadd.f32 %v1618_v25, %v1616_v51 }
 0x254   : > { %v696_v32 = vpop.xlane.xlu1 %695 }
 0x255   : > { %v1620_v33 = vpop.eup %1619  ;;  %v777_v34 = vmul.f32 1.442695, %v733_v52  ;;  %v779_v35 = vmul.f32 1.442695, %v734_v54  ;;  %v735_v36 = vsub.f32 %v2348_v62, %v696_v32  ;;  %v736_v37 = vsub.f32 %v2352_v0, %v696_v32  ;;  %824 = vadd.xlane.f32.xlu0 %v823_v31 }
 0x256   : > { %v1622_v41 = vpop.eup %1621  ;;  %v867_v43 = vpack.c.bf16 %v1620_v33, %v1616_v51 }
 0x257   : > { %1631 = vpow2.f32 %v777_v34  ;;  %v781_v47 = vmul.f32 1.442695, %v735_v36  ;;  %v783_v49 = vmul.f32 1.442695, %v736_v37  ;;  %v868_v53 = vpack.c.bf16 %v1622_v41, %v1618_v25 }
 0x258   : > { %1633 = vpow2.f32 %v779_v35  ;;  %v826_v59 = vadd.f32 %v1622_v41, %v1620_v33 }
 0x259   : > { %v1624_v55 = vpop.eup %1623  ;;  %1635 = vpow2.f32 %v781_v47  ;;  %1017 = vmatprep.mubr.bf16.mxu1 %v868_v53 }
 0x25a   : > { %v1626_v61 = vpop.eup %1625  ;;  %1637 = vpow2.f32 %v783_v49  ;;  %827 = vadd.xlane.f32.xlu1 %v826_v59  ;;  %1018 = vmatmul.mubr.bf16.gmra.mrb[4].mxu1 %v867_v43  ;;  %v699_v56 = vpop.xlane.xlu0 %698 }
 0x25b   : > { %v1628_v62 = vpop.eup %1627  ;;  %v737_v0 = vsub.f32 %v2359_v5, %v699_v56  ;;  %v738_v38 = vsub.f32 %v2362_v7, %v699_v56  ;;  %v829_v39 = vadd.f32 %v1626_v61, %v1624_v55 }
 0x25c   : > { %v1630_v57 = vpop.eup %1629  ;;  %v702_v58 = vpop.xlane.xlu1 %701  ;;  %v869_v40 = vpack.c.bf16 %v1628_v62, %v1624_v55 }
 0x25d   : > { %v785_v42 = vmul.f32 1.442695, %v737_v0  ;;  %v787_v60 = vmul.f32 1.442695, %v738_v38  ;;  %v739_v63 = vsub.f32 %v2364_v8, %v702_v58  ;;  %v740_v1 = vsub.f32 %v2368_v10, %v702_v58  ;;  %830 = vadd.xlane.f32.xlu0 %v829_v39 }
 0x25e   : > { %v870_v2 = vpack.c.bf16 %v1630_v57, %v1626_v61  ;;  %v832_v44 = vadd.f32 %v1630_v57, %v1628_v62 }
 0x25f   : > { %1639 = vpow2.f32 %v785_v42  ;;  %v789_v45 = vmul.f32 1.442695, %v739_v63  ;;  %v791_v3 = vmul.f32 1.442695, %v740_v1 }
 0x260   : > { %1641 = vpow2.f32 %v787_v60  ;;  %1025 = vmatprep.mubr.bf16.mxu1 %v870_v2  ;;  %833 = vadd.xlane.f32.xlu1 %v832_v44 }
 0x261   : > { %v1632_v5 = vpop.eup %1631  ;;  %1643 = vpow2.f32 %v789_v45 }
 0x262   : > { %v1634_v7 = vpop.eup %1633  ;;  %1645 = vpow2.f32 %v791_v3  ;;  %1026 = vmatmul.mubr.bf16.gmra.mrb[8].mxu1 %v869_v40  ;;  %v705_v4 = vpop.xlane.xlu0 %704 }
 0x263   : > { %v1636_v6 = vpop.eup %1635  ;;  %v741_v8 = vsub.f32 %v2374_v14, %v705_v4  ;;  %v742_v10 = vsub.f32 %v2376_v15, %v705_v4  ;;  %v835_v9 = vadd.f32 %v1634_v7, %v1632_v5 }
 0x264   : > { %v1638_v11 = vpop.eup %1637  ;;  %v708_v46 = vpop.xlane.xlu1 %707  ;;  %v871_v48 = vpack.c.bf16 %v1636_v6, %v1632_v5 }
 0x265   : > { %v793_v12 = vmul.f32 1.442695, %v741_v8  ;;  %v795_v13 = vmul.f32 1.442695, %v742_v10  ;;  %v743_v17 = vsub.f32 %v2378_v16, %v708_v46  ;;  %v744_v19 = vsub.f32 %v2382_v18, %v708_v46  ;;  %836 = vadd.xlane.f32.xlu0 %v835_v9 }
 0x266   : > { %v872_v23 = vpack.c.bf16 %v1638_v11, %v1634_v7  ;;  %v838_v50 = vadd.f32 %v1638_v11, %v1636_v6 }
 0x267   : > { %1647 = vpow2.f32 %v793_v12  ;;  %v797_v51 = vmul.f32 1.442695, %v743_v17  ;;  %v799_v25 = vmul.f32 1.442695, %v744_v19 }
 0x268   : > { %1649 = vpow2.f32 %v795_v13  ;;  %1033 = vmatprep.mubr.bf16.mxu1 %v872_v23  ;;  %839 = vadd.xlane.f32.xlu1 %v838_v50 }
 0x269   : > { %v1640_v14 = vpop.eup %1639  ;;  %1651 = vpow2.f32 %v797_v51 }
 0x26a   : > { %v1642_v15 = vpop.eup %1641  ;;  %1653 = vpow2.f32 %v799_v25  ;;  %1034 = vmatmul.mubr.bf16.gmra.mrb[12].mxu1 %v871_v48  ;;  %v711_v29 = vpop.xlane.xlu0 %710 }
 0x26b   : > { %v1644_v52 = vpop.eup %1643  ;;  %v745_v16 = vsub.f32 %v2386_v20, %v711_v29  ;;  %v746_v18 = vsub.f32 %v2388_v21, %v711_v29  ;;  %v841_v54 = vadd.f32 %v1642_v15, %v1640_v14 }
 0x26c   : > { %v1646_v31 = vpop.eup %1645  ;;  %v714_v32 = vpop.xlane.xlu1 %713  ;;  %v873_v33 = vpack.c.bf16 %v1644_v52, %v1640_v14 }
 0x26d   : > { %v801_v34 = vmul.f32 1.442695, %v745_v16  ;;  %v803_v35 = vmul.f32 1.442695, %v746_v18  ;;  %v747_v36 = vsub.f32 %v2390_v22, %v714_v32  ;;  %v748_v37 = vsub.f32 %v2394_v24, %v714_v32  ;;  %842 = vadd.xlane.f32.xlu0 %v841_v54 }
 0x26e   : > { %v874_v41 = vpack.c.bf16 %v1646_v31, %v1642_v15  ;;  %v844_v43 = vadd.f32 %v1646_v31, %v1644_v52 }
 0x26f   : > { %1655 = vpow2.f32 %v801_v34  ;;  %v805_v47 = vmul.f32 1.442695, %v747_v36  ;;  %v807_v49 = vmul.f32 1.442695, %v748_v37 }
 0x270   : > { %1657 = vpow2.f32 %v803_v35  ;;  %1041 = vmatprep.mubr.bf16.mxu1 %v874_v41  ;;  %845 = vadd.xlane.f32.xlu1 %v844_v43 }
 0x271   : > { %v1648_v20 = vpop.eup %1647  ;;  %1659 = vpow2.f32 %v805_v47 }
 0x272   : > { %v1650_v21 = vpop.eup %1649  ;;  %1661 = vpow2.f32 %v807_v49  ;;  %1042 = vmatmul.mubr.bf16.gmra.mrb[16].mxu1 %v873_v33  ;;  %v717_v53 = vpop.xlane.xlu0 %716 }
 0x273   : > { %v1652_v59 = vpop.eup %1651  ;;  %v749_v22 = vsub.f32 %v2398_v26, %v717_v53  ;;  %v750_v24 = vsub.f32 %v2400_v27, %v717_v53  ;;  %v847_v55 = vadd.f32 %v1650_v21, %v1648_v20 }
 0x274   : > { %v1654_v61 = vpop.eup %1653  ;;  %v720_v56 = vpop.xlane.xlu1 %719  ;;  %v875_v62 = vpack.c.bf16 %v1652_v59, %v1648_v20 }
 0x275   : > { %v809_v0 = vmul.f32 1.442695, %v749_v22  ;;  %v811_v38 = vmul.f32 1.442695, %v750_v24  ;;  %848 = vadd.xlane.f32.xlu0 %v847_v55  ;;  %v751_v39 = vsub.f32 %v2402_v28, %v720_v56  ;;  %v752_v57 = vsub.f32 %v2406_v30, %v720_v56 }
 0x276   : > { %v876_v58 = vpack.c.bf16 %v1654_v61, %v1650_v21  ;;  %v850_v40 = vadd.f32 %v1654_v61, %v1652_v59 }
 0x277   : > { %1663 = vpow2.f32 %v809_v0  ;;  %v813_v42 = vmul.f32 1.442695, %v751_v39  ;;  %v815_v60 = vmul.f32 1.442695, %v752_v57 }
 0x278   : > { %1665 = vpow2.f32 %v811_v38  ;;  %1049 = vmatprep.mubr.bf16.mxu1 %v876_v58  ;;  %851 = vadd.xlane.f32.xlu1 %v850_v40 }
 0x279   : > { %v1656_v26 = vpop.eup %1655  ;;  %1667 = vpow2.f32 %v813_v42 }
 0x27a   : > { %v1658_v27 = vpop.eup %1657  ;;  %1669 = vpow2.f32 %v815_v60  ;;  %1050 = vmatmul.mubr.bf16.gmra.mrb[20].mxu1 %v875_v62 }
 0x27b   : > { %v1660_v63 = vpop.eup %1659  ;;  %v853_v1 = vadd.f32 %v1658_v27, %v1656_v26 }
 0x27c   : > { %v1662_v2 = vpop.eup %1661  ;;  %v877_v44 = vpack.c.bf16 %v1660_v63, %v1656_v26 }
 0x27d   : > { %854 = vadd.xlane.f32.xlu0 %v853_v1  ;;  %v878_v28 = vpack.c.bf16 %v1662_v2, %v1658_v27  ;;  %v856_v30 = vadd.f32 %v1662_v2, %v1660_v63 }
 0x27f   : > { %1057 = vmatprep.mubr.bf16.mxu1 %v878_v28  ;;  %857 = vadd.xlane.f32.xlu1 %v856_v30 }
 0x281   : > { %v1664_v45 = vpop.eup %1663 }
 0x282   : > { %v1666_v3 = vpop.eup %1665  ;;  %1058 = vmatmul.mubr.bf16.gmra.mrb[24].mxu1 %v877_v44 }
 0x283   : > { %v1668_v5 = vpop.eup %1667  ;;  %v859_v7 = vadd.f32 %v1666_v3, %v1664_v45 }
 0x284   : > { %v1670_v4 = vpop.eup %1669  ;;  %v879_v6 = vpack.c.bf16 %v1668_v5, %v1664_v45 }
 0x285   : > { %860 = vadd.xlane.f32.xlu0 %v859_v7  ;;  %v880_v8 = vpack.c.bf16 %v1670_v4, %v1666_v3  ;;  %v862_v10 = vadd.f32 %v1670_v4, %v1668_v5 }
 0x287   : > { %1065 = vmatprep.mubr.bf16.mxu1 %v880_v8  ;;  %863 = vadd.xlane.f32.xlu1 %v862_v10 }
 0x28a   : > { %1066 = vmatmul.mubr.bf16.gmra.mrb[28].mxu1 %v879_v6 }
 0x2da   : > { %v819_v9 = vpop.xlane.xlu0 %818 }
 0x2db   : > { %1671 = vrcp.f32 %v819_v9 }
 0x2df   : > { %v822_v11 = vpop.xlane.xlu1 %821 }
 0x2e0   : > { %1673 = vrcp.f32 %v822_v11 }
 0x2e2   : > { %v825_v46 = vpop.xlane.xlu0 %824 }
 0x2e3   : > { %1675 = vrcp.f32 %v825_v46 }
 0x2e5   : > { %v1672_v23 = vpop.eup %1671 }
 0x2e7   : > { %v828_v48 = vpop.xlane.xlu1 %827 }
 0x2e8   : > { %1677 = vrcp.f32 %v828_v48 }
 0x2ea   : > { %v1674_v14 = vpop.eup %1673  ;;  %v831_v15 = vpop.xlane.xlu0 %830 }
 0x2eb   : > { %1679 = vrcp.f32 %v831_v15 }
 0x2ed   : > { %v834_v52 = vpop.xlane.xlu1 %833  ;;  %v1676_v32 = vpop.eup %1675 }
 0x2ee   : > { %1681 = vrcp.f32 %v834_v52 }
 0x2f2   : > { %v1678_v36 = vpop.eup %1677  ;;  %v837_v37 = vpop.xlane.xlu0 %836 }
 0x2f3   : > { %1683 = vrcp.f32 %v837_v37 }
 0x2f5   : > { %v840_v43 = vpop.xlane.xlu1 %839  ;;  %v1680_v53 = vpop.eup %1679 }
 0x2f6   : > { %1685 = vrcp.f32 %v840_v43 }
 0x2f8   : > { %v1682_v55 = vpop.eup %1681 }
 0x2fa   : > { %v843_v61 = vpop.xlane.xlu0 %842 }
 0x2fb   : > { %1687 = vrcp.f32 %v843_v61 }
 0x2fd   : > { %v846_v62 = vpop.xlane.xlu1 %845  ;;  %v1684_v58 = vpop.eup %1683 }
 0x2fe   : > { %1689 = vrcp.f32 %v846_v62 }
 0x300   : > { %v1686_v26 = vpop.eup %1685 }
 0x302   : > { %v849_v27 = vpop.xlane.xlu0 %848 }
 0x303   : > { %1691 = vrcp.f32 %v849_v27 }
 0x305   : > { %v852_v1 = vpop.xlane.xlu1 %851  ;;  %v1688_v45 = vpop.eup %1687 }
 0x306   : > { %1693 = vrcp.f32 %v852_v1 }
 0x308   : > { %v1690_v4 = vpop.eup %1689 }
 0x30a   : > { %v855_v6 = vpop.xlane.xlu0 %854 }
 0x30b   : > { %1695 = vrcp.f32 %v855_v6 }
 0x30c   : > { %v858_v10 = vpop.xlane.xlu1 %857 }
 0x30d   : > { %1697 = vrcp.f32 %v858_v10 }
 0x325   : > { %v1395_v12 = vpop.f32.mrb[0].mxu1 }
 0x326   : > { %v1396_v13 = vpop.f32.mrb[1].mxu1 }
 0x327   : > { %v1397_v17 = vadd.f32 %v1396_v13, %v1395_v12  ;;  %v1398_v19 = vpop.f32.mrb[2].mxu1  ;;  %v1692_v12 = vpop.eup %1691 }
 0x328   : > { %v1399_v50 = vpop.f32.mrb[3].mxu1 }
 0x329   : > { %v1090_v51 = vmul.f32 %v1672_v23, %v1397_v17  ;;  %v1400_v25 = vadd.f32 %v1399_v50, %v1398_v19  ;;  %v1694_v23 = vpop.eup %1693  ;;  %v861_v50 = vpop.xlane.xlu0 %860 }
 0x32a   : > { %1699 = vrcp.f32 %v861_v50 }
 0x32b   : > { %1107 = vst.msk [vmem:[%s2443_s6] sm:$0xff] %vm1106_vm1, %v1090_v51  ;;  %v1091_v29 = vmul.f32 %v1674_v14, %v1400_v25  ;;  %v864_v25 = vpop.xlane.xlu1 %863 }
 0x32c   : > { %1701 = vrcp.f32 %v864_v25 }
 0x32d   : > { %1108 = vst.msk [vmem:[%s2443_s6 + $0x8] sm:$0xff] %vm1106_vm1, %v1091_v29  ;;  %v1401_v16 = vpop.f32.mrb[4].mxu1 }
 0x32e   : > { %v1402_v18 = vpop.f32.mrb[5].mxu1 }
 0x32f   : > { %v1403_v54 = vadd.f32 %v1402_v18, %v1401_v16  ;;  %v1404_v31 = vpop.f32.mrb[6].mxu1  ;;  %v1696_v16 = vpop.eup %1695 }
 0x330   : > { %v1405_v33 = vpop.f32.mrb[7].mxu1 }
 0x331   : > { %v1092_v34 = vmul.f32 %v1676_v32, %v1403_v54  ;;  %v1406_v35 = vadd.f32 %v1405_v33, %v1404_v31  ;;  %v1698_v32 = vpop.eup %1697 }
 0x333   : > { %1109 = vst.msk [vmem:[%s2443_s6 + $0x10] sm:$0xff] %vm1106_vm1, %v1092_v34  ;;  %v1093_v41 = vmul.f32 %v1678_v36, %v1406_v35 }
 0x335   : > { %1110 = vst.msk [vmem:[%s2443_s6 + $0x18] sm:$0xff] %vm1106_vm1, %v1093_v41  ;;  %v1407_v47 = vpop.f32.mrb[8].mxu1  ;;  %v1700_v41 = vpop.eup %1699 }
 0x336   : > { %v1408_v49 = vpop.f32.mrb[9].mxu1 }
 0x337   : > { %v1409_v20 = vadd.f32 %v1408_v49, %v1407_v47  ;;  %v1410_v21 = vpop.f32.mrb[10].mxu1 }
 0x338   : > { %v1411_v59 = vpop.f32.mrb[11].mxu1 }
 0x339   : > { %v1094_v22 = vmul.f32 %v1680_v53, %v1409_v20  ;;  %v1412_v24 = vadd.f32 %v1411_v59, %v1410_v21  ;;  %v1702_v20 = vpop.eup %1701 }
 0x33b   : > { %1111 = vst.msk [vmem:[%s2443_s6 + $0x20] sm:$0xff] %vm1106_vm1, %v1094_v22  ;;  %v1095_v56 = vmul.f32 %v1682_v55, %v1412_v24 }
 0x33d   : > { %1112 = vst.msk [vmem:[%s2443_s6 + $0x28] sm:$0xff] %vm1106_vm1, %v1095_v56  ;;  %v1413_v0 = vpop.f32.mrb[12].mxu1 }
 0x33e   : > { %v1414_v38 = vpop.f32.mrb[13].mxu1 }
 0x33f   : > { %v1415_v39 = vadd.f32 %v1414_v38, %v1413_v0  ;;  %v1416_v57 = vpop.f32.mrb[14].mxu1 }
 0x340   : > { %v1417_v40 = vpop.f32.mrb[15].mxu1 }
 0x341   : > { %v1096_v42 = vmul.f32 %v1684_v58, %v1415_v39  ;;  %v1418_v60 = vadd.f32 %v1417_v40, %v1416_v57 }
 0x343   : > { %1113 = vst.msk [vmem:[%s2443_s6 + $0x30] sm:$0xff] %vm1106_vm1, %v1096_v42  ;;  %v1097_v63 = vmul.f32 %v1686_v26, %v1418_v60 }
 0x345   : > { %1114 = vst.msk [vmem:[%s2443_s6 + $0x38] sm:$0xff] %vm1106_vm1, %v1097_v63  ;;  %v1419_v2 = vpop.f32.mrb[16].mxu1 }
 0x346   : > { %v1420_v44 = vpop.f32.mrb[17].mxu1 }
 0x347   : > { %v1421_v28 = vadd.f32 %v1420_v44, %v1419_v2  ;;  %v1422_v30 = vpop.f32.mrb[18].mxu1 }
 0x348   : > { %v1423_v3 = vpop.f32.mrb[19].mxu1 }
 0x349   : > { %v1098_v5 = vmul.f32 %v1688_v45, %v1421_v28  ;;  %v1424_v7 = vadd.f32 %v1423_v3, %v1422_v30 }
 0x34b   : > { %1115 = vst.msk [vmem:[%s2443_s6 + $0x40] sm:$0xff] %vm1106_vm1, %v1098_v5  ;;  %v1099_v8 = vmul.f32 %v1690_v4, %v1424_v7 }
 0x34d   : > { %1116 = vst.msk [vmem:[%s2443_s6 + $0x48] sm:$0xff] %vm1106_vm1, %v1099_v8  ;;  %v1425_v9 = vpop.f32.mrb[20].mxu1 }
 0x34e   : > { %v1426_v11 = vpop.f32.mrb[21].mxu1 }
 0x34f   : > { %v1427_v46 = vadd.f32 %v1426_v11, %v1425_v9  ;;  %v1428_v48 = vpop.f32.mrb[22].mxu1 }
 0x350   : > { %v1429_v13 = vpop.f32.mrb[23].mxu1 }
 0x351   : > { %v1100_v17 = vmul.f32 %v1692_v12, %v1427_v46  ;;  %v1430_v19 = vadd.f32 %v1429_v13, %v1428_v48 }
 0x353   : > { %1117 = vst.msk [vmem:[%s2443_s6 + $0x50] sm:$0xff] %vm1106_vm1, %v1100_v17  ;;  %v1101_v51 = vmul.f32 %v1694_v23, %v1430_v19 }
 0x355   : > { %1118 = vst.msk [vmem:[%s2443_s6 + $0x58] sm:$0xff] %vm1106_vm1, %v1101_v51  ;;  %v1431_v14 = vpop.f32.mrb[24].mxu1 }
 0x356   : > { %v1432_v15 = vpop.f32.mrb[25].mxu1 }
 0x357   : > { %v1433_v29 = vadd.f32 %v1432_v15, %v1431_v14  ;;  %v1434_v52 = vpop.f32.mrb[26].mxu1 }
 0x358   : > { %v1435_v18 = vpop.f32.mrb[27].mxu1 }
 0x359   : > { %v1102_v54 = vmul.f32 %v1696_v16, %v1433_v29  ;;  %v1436_v31 = vadd.f32 %v1435_v18, %v1434_v52 }
 0x35b   : > { %1119 = vst.msk [vmem:[%s2443_s6 + $0x60] sm:$0xff] %vm1106_vm1, %v1102_v54  ;;  %v1103_v33 = vmul.f32 %v1698_v32, %v1436_v31 }
 0x35d   : > { %1120 = vst.msk [vmem:[%s2443_s6 + $0x68] sm:$0xff] %vm1106_vm1, %v1103_v33  ;;  %v1437_v34 = vpop.f32.mrb[28].mxu1 }
 0x35e   : > { %v1438_v35 = vpop.f32.mrb[29].mxu1 }
 0x35f   : > { %v1439_v36 = vadd.f32 %v1438_v35, %v1437_v34  ;;  %v1440_v37 = vpop.f32.mrb[30].mxu1 }
 0x360   : > { %v1441_v43 = vpop.f32.mrb[31].mxu1 }
 0x361   : > { %v1104_v47 = vmul.f32 %v1700_v41, %v1439_v36  ;;  %v1442_v49 = vadd.f32 %v1441_v43, %v1440_v37 }
 0x363   : > { %1121 = vst.msk [vmem:[%s2443_s6 + $0x70] sm:$0xff] %vm1106_vm1, %v1104_v47  ;;  %v1105_v21 = vmul.f32 %v1702_v20, %v1442_v49 }
 0x365   : > { %1122 = vst.msk [vmem:[%s2443_s6 + $0x78] sm:$0xff] %vm1106_vm1, %v1105_v21 }
 0x366   : > { %1806 = shalt.err (!%p1803_p5)
}
 0x367   : > { %s1807_s6 = scalar_lea.hbm %s2479_s4, 2048  ;;  %s1811_s5 = scalar_lea.hbm %s2612_s9, 8192 }
 0x368   : > { %p1808_p0 = scmp.ne.s32.totalorder %s2479_s4, %s1807_s6  ;;  %p1812_p1 = scmp.lt.u32.totalorder %s2479_s4, %s2612_s9 }
 0x369   : > { %p1813_p3 = scmp.lt.u32.totalorder %s1811_s5, %s1807_s6  ;;  %p1815_p8 = scmp.lt.u32.totalorder %s1807_s6, %s2479_s4 }
 0x36a   : > { %p1809_p12 = pnand %p1808_p0, %p2613_p13 }
 0x36b   : > { %p1814_p7 = por %p1813_p3, %p1812_p1 }
 0x36c   : > { %p1810_p11 = pneg %p1809_p12 }
 0x36d   : > { %p1816_p10 = por %p1815_p8, %p1814_p7 }
 0x36f   : > { %p1817_p4 = pnand %p1816_p10, %p1810_p11 }
 0x371   : > { %1820 = shalt.err (!%p1817_p4)
}
 0x372   : > { %s1927_s25 = smov 128   ;;  %s1928_s8 = smov 8  }
 0x373   : > { %1457 = dma.vmem_to_hbm [thread:$0]  (%p2613_p13), %s2481_s7, 2048, %s2479_s4, %s1124_s18, %s1927_s25, %s1927_s25, %s1928_s8  }
 0x374 PF: > { %s2614_s10 = sld [smem:[#allocation13_spill]]  ;;  %s2615_s12 = sld [smem:[#allocation20_spill]] }
 0x375   : > { %p1474_p2 = scmp.ge.s32.totalorder %s1919_s22, 2 }
 0x37a   : > { %s1154_s23 = sand.u32 1, %s2614_s10   ;;  %p2616_p9 = scmp.ne.s32.totalorder %s2615_s12, 0 }
 0x37b   : > { %s1155_s29 = scalar_lea.sflag [#allocation4], %s1154_s23 }
 0x37c   : > { %p1470_p6 = pnand %p1474_p2, %p2616_p9 }
 0x37e   : > { %1874 = dma.done.wait (!%p1470_p6), %s1155_s29, 2048  }
 0x37f   : > { %1876 = vsyncadd (!%p1470_p6), %s1155_s29, 4294965248  ;;  %s22_s22 = sadd.s32 1, %s1919_s22   ;;  %s2617_s12 = sld [smem:[#allocation12_spill]] }
 0x380   : > { %p19_p5 = scmp.ge.s32.totalorder %s22_s22, 6   ;;  %s2618_s1 = sld [smem:[#allocation18_spill]] }
 0x381   : > { %s2619_s13 = smov %s1887_s14  ;;  %s2620_s14 = smov %s2132_s19 }
 0x382   : > { %s2621_s15 = smov %s1895_s16  ;;  %s2622_s16 = smov %s1899_s17 }
 0x383   : > { %s2623_s17 = smov %s2135_s24  ;;  %s2624_s18 = smov %s1911_s20 }
 0x384   : > { %s2625_s19 = smov %s1915_s21  ;;  %s2627_s21 = smov %s2633_s28 }
 0x385   :  { %21 = sbr.rel (!%p19_p5) target bundleno = 14 (0xe), region = 101 }
 0x386   : > { %s2626_s20 = smov %s2618_s1 }
 0x38c   :  { %1160 = vsyncpa [#allocation3], 1 }
 0x38d   :  { %1162 = vsyncpa [#allocation3 + $0x1], 1 }
 0x38e   :  { %1163 = vsyncpa [#allocation6], 1 }
 0x38f   :  { %1165 = vsyncpa [#allocation6 + $0x1], 1 }
 0x390   :  { %1166 = vsyncpa [#allocation4], 1 }
 0x391   :  { %1168 = vsyncpa [#allocation4 + $0x1], 1 }

</bundles_post_ra>
